<compile_context>
chip_gen: v5e
topology: v5e:2x2
jax: 0.10.0
libtpu: 0.0.40
codegen_flags: <defaults>
</compile_context>

<pallas_src>
import numpy as np
import jax
import jax.numpy as jnp
from jax.experimental import pallas as pl
from jax.experimental.pallas import tpu as pltpu

# `iScale` is a module-level global (== 1) in the original repository; the
# stored self.lamda is not used in forward().  If iScale ever becomes
# runtime-varying it should move to an SMEM scalar instead of being folded at
# trace time.
ISCALE = 1.0


# ---------------------------------------------------------------------------
# Constant DFT operand matrices (built once in float64, rounded once)
# ---------------------------------------------------------------------------
def _dft_parts(n):
    """Orthonormal forward DFT matrix of size n: (Fr, Fi, Fr+Fi, Fr-Fi).

    The sum/difference combinations are the loop-invariant Karatsuba operands;
    building them here means the kernel never recomputes them and they are
    rounded to the matmul dtype exactly once.
    """
    j = np.arange(n)
    ang = -2.0 * np.pi * np.outer(j, j) / n
    s = 1.0 / np.sqrt(n)
    fr = np.cos(ang) * s
    fi = np.sin(ang) * s
    return fr, fi, fr + fi, fr - fi


# ---------------------------------------------------------------------------
# Kernel
# ---------------------------------------------------------------------------
def _make_kernel(nb, H, W, same_hw, iscale, mm_dtype):
    """Per grid step: nb images, 4 complex DFT stages + data consistency.

    Stages 1 and 4 (right-multiplies by the W-size DFT matrix) run as one flat
    (nb*H, W) matmul each; stages 2-3 (left-multiplies by the H-size matrix)
    and the data-consistency update run per image inside a rolled pl.loop.
    All matmuls accumulate in f32; only operands are cast to `mm_dtype`.
    """
    flat = nb * H

    def mm(a, b):
        return jnp.dot(a.astype(mm_dtype), b.astype(mm_dtype),
                       preferred_element_type=jnp.float32)

    def body(fh_r, fh_i, fh_s, fh_d, fw_r, fw_i, fw_s,
             x_ref, y_ref, m_ref, o_ref, s1r, s1i, s4r, s4i):
        # ---- Stage 1: forward W-transform  A = X @ Fw, batch-flattened -----
        # (nb, H, W) -> (nb*H, W) is layout-free because nb > 1 only when
        # H % 8 == 0 (wrapper guarantee); operands are cast AFTER the reshape
        # (a bf16 cast before it would need H % 16).
        xr = x_ref[:, 0, :, :].reshape(flat, W)
        xi = x_ref[:, 1, :, :].reshape(flat, W)
        p1 = mm(xr, fw_r)
        p2 = mm(xi, fw_i)
        p3 = mm(xr + xi, fw_s)
        s1r[...] = p1 - p2              # Re(X @ Fw)
        s1i[...] = p3 - p1 - p2         # Im(X @ Fw)

        # ---- Stages 2-3: per-image H-transforms + data consistency ---------
        # Rolled loop so live ranges stay bounded for any nb.
        # TODO(synk): for H < 256 the left-multiplies under-fill the MXU M dim;
        # a transposed, batch-flattened variant (A^T @ Fh, DFT matrix is
        # symmetric) could fill it at the cost of two XLU transposes — only
        # adopt after a bundle dump shows the transposes stay off the MXU path.
        @pl.loop(0, nb)
        def _(b):
            row = b * H
            if H % 8 == 0:
                row = pl.multiple_of(row, 8)
            a_r = s1r[pl.ds(row, H), :]
            a_i = s1i[pl.ds(row, H), :]

            # forward H-transform: Xf = Fh @ A
            q1 = mm(fh_r, a_r)
            q2 = mm(fh_i, a_i)
            q3 = mm(fh_s, a_r + a_i)
            xfr = q1 - q2
            xfi = q3 - q1 - q2

            # data consistency (f32): z = xf + iScale * mask * (y - xf)
            m = m_ref[b]
            sm = m if iscale == 1.0 else iscale * m
            zr = xfr + sm * (y_ref[b, 0] - xfr)
            zi = xfi + sm * (y_ref[b, 1] - xfi)

            # inverse H-transform: C = conj(Fh) @ Z
            #   Re = Fr@zr + Fi@zi ; Im = Fr@zi - Fi@zr ; r3 = (Fr-Fi)@(zr+zi)
            r1 = mm(fh_r, zr)
            r2 = mm(fh_i, zi)
            r3 = mm(fh_d, zr + zi)
            s4r[pl.ds(row, H), :] = r1 + r2
            s4i[pl.ds(row, H), :] = r3 - r1 + r2

        # ---- Stage 4: inverse W-transform  out = C @ conj(Fw), flattened ---
        #   Re = Cr@Fr + Ci@Fi ; Im = Ci@Fr - Cr@Fi ; t3 = (Ci-Cr)@(Fr+Fi)
        cr = s4r[...]
        ci = s4i[...]
        t1 = mm(cr, fw_r)
        t2 = mm(ci, fw_i)
        t3 = mm(ci - cr, fw_s)
        o_ref[:, 0, :, :] = (t1 + t2).reshape(nb, H, W)
        o_ref[:, 1, :, :] = (t3 + t1 - t2).reshape(nb, H, W)

    if same_hw:
        def kernel(f_r_ref, f_i_ref, f_s_ref, f_d_ref,
                   x_ref, y_ref, m_ref, o_ref, s1r, s1i, s4r, s4i):
            f_r = f_r_ref[...]
            f_i = f_i_ref[...]
            f_s = f_s_ref[...]
            f_d = f_d_ref[...]
            body(f_r, f_i, f_s, f_d, f_r, f_i, f_s,
                 x_ref, y_ref, m_ref, o_ref, s1r, s1i, s4r, s4i)
    else:
        def kernel(fh_r_ref, fh_i_ref, fh_s_ref, fh_d_ref,
                   fw_r_ref, fw_i_ref, fw_s_ref,
                   x_ref, y_ref, m_ref, o_ref, s1r, s1i, s4r, s4i):
            body(fh_r_ref[...], fh_i_ref[...], fh_s_ref[...], fh_d_ref[...],
                 fw_r_ref[...], fw_i_ref[...], fw_s_ref[...],
                 x_ref, y_ref, m_ref, o_ref, s1r, s1i, s4r, s4i)

    return kernel


# ---------------------------------------------------------------------------
# Generation-aware sizing
# ---------------------------------------------------------------------------
def _tpu_params():
    """(mxu_m_rows, vmem_budget_bytes) for the current backend, with fallbacks."""
    vmem_cap = 128 * 1024 * 1024
    try:
        vmem_cap = int(pltpu.get_tpu_info().vmem_capacity_bytes)
    except Exception:
        pass
    kind = ""
    try:
        kind = jax.devices()[0].device_kind.lower()
    except Exception:
        pass
    mxu_m = 128 if "v5" in kind else 256          # v5e: 128-wide MXU; v6e/v7x: 256
    if vmem_cap <= 64 * 1024 * 1024:              # v7x: 64 MiB/TC -> leave headroom
        budget = int(0.85 * vmem_cap)
    else:                                         # v5e/v6e: 128 MiB -> use ~100 MiB
        budget = min(int(0.80 * vmem_cap), 100 * 1024 * 1024)
    return mxu_m, budget


def _vmem_estimate(nb, H, W, same_hw, mm_bytes):
    """Rough per-step VMEM footprint (bytes) used to size nb and the limit."""
    plane = nb * H * W * 4                        # one f32 (nb, H, W) plane
    io_in = 2 * 5 * plane                         # x(2)+y(2)+mask, double-buffered
    io_out = 2 * 2 * plane                        # output, double-buffered
    scratch = 4 * plane                           # s1r/s1i/s4r/s4i (f32)
    mat_elems = 4 * H * H + (0 if same_hw else 3 * W * W)
    mats = 2 * mat_elems * mm_bytes               # constant DFT inputs, double-buffered
    live = 8 * plane + 16 * H * W * 4             # matmul operands/results in flight
    return int(1.25 * (io_in + io_out + scratch + mats + live))


def _pick_nb(B, H, W, same_hw, mm_bytes, mxu_m, vmem_budget):
    """Images folded per grid step.

    Priority: fill the MXU M dimension (nb*H >= mxu_m rows), keep the grid-step
    count even (v7x shards the parallel axis across 2 TensorCores), then prefer
    bigger blocks (fewer ~0.35us grid steps) — subject to the per-step VMEM
    estimate fitting the generation-aware budget.
    """
    if H % 8 != 0:
        return 1                                  # flat (nb,H,W)->(nb*H,W) would relayout
    divisors = [d for d in range(1, B + 1) if B % d == 0]
    feasible = [d for d in divisors
                if _vmem_estimate(d, H, W, same_hw, mm_bytes) <= vmem_budget]
    if not feasible:
        return 1

    def score(nb):
        steps = B // nb
        return (min(nb * H, mxu_m), int(steps % 2 == 0), nb)

    return max(feasible, key=score)


# ---------------------------------------------------------------------------
# Wrapper
# ---------------------------------------------------------------------------
def data_fidelity_unit(xin, y, mask, *, matmul_dtype=jnp.bfloat16):
    """Pallas forward pass of dataFidelityUnit.

    xin : (B, 2, H, W)  image-domain real/imag channels (NCHW)
    y   : (B, H, W, 2)  measured k-space, real/imag last (as in the torch code)
    mask: (B, H, W) or (B, H, W, 1)
    Returns (B, 2, H, W) float32.

    matmul_dtype: MXU operand dtype.  bf16 (default) runs the DFT matmuls at
    full MXU rate with f32 accumulation; pass jnp.float32 for exact accuracy.
    """
    B, C, H, W = xin.shape
    assert C == 2, "xin must be NCHW with 2 channels (real, imag)"
    assert y.shape == (B, H, W, 2), "y must be (B, H, W, 2)"
    if mask.ndim == 4 and mask.shape[-1] == 1:
        mask = mask[..., 0]
    assert mask.shape == (B, H, W), "mask must be (B, H, W) or (B, H, W, 1)"

    mm_dtype = np.dtype(matmul_dtype)
    same_hw = (H == W)

    # Constant DFT operands (Fr, Fi, Fr+Fi, Fr-Fi), rounded once to mm_dtype.
    parts_h = _dft_parts(H)
    if same_hw:
        mats = tuple(jnp.asarray(a, dtype=mm_dtype) for a in parts_h)
    else:
        parts_w = _dft_parts(W)
        mats = tuple(jnp.asarray(a, dtype=mm_dtype)
                     for a in (*parts_h, *parts_w[:3]))

    x = xin.astype(jnp.float32)
    # k-space relayout (B,H,W,2) -> (B,2,H,W): one HBM pass so the real/imag
    # planes are lane-dense inside the kernel.
    # TODO(synk): drop this transpose if the upstream producer can emit y in
    # (B, 2, H, W) directly — the kernel is compute-bound and this is a pure
    # serial HBM pass.
    yt = jnp.transpose(y.astype(jnp.float32), (0, 3, 1, 2))
    m = mask.astype(jnp.float32)

    mxu_m, vmem_budget = _tpu_params()
    nb = _pick_nb(B, H, W, same_hw, mm_dtype.itemsize, mxu_m, vmem_budget)
    grid = (B // nb,)

    # Constant index_map: the pipeline does not re-fetch these across steps.
    mat_specs = [pl.BlockSpec((H, H), lambda g: (0, 0)) for _ in range(4)]
    if not same_hw:
        mat_specs += [pl.BlockSpec((W, W), lambda g: (0, 0)) for _ in range(3)]
    img_spec = pl.BlockSpec((nb, 2, H, W), lambda g: (g, 0, 0, 0))
    msk_spec = pl.BlockSpec((nb, H, W), lambda g: (g, 0, 0))

    est = _vmem_estimate(nb, H, W, same_hw, mm_dtype.itemsize)
    vmem_limit = int(min(vmem_budget, max(est, 32 * 1024 * 1024)))

    kernel = _make_kernel(nb, H, W, same_hw, ISCALE, mm_dtype)

    out = pl.pallas_call(
        kernel,
        out_shape=jax.ShapeDtypeStruct((B, 2, H, W), jnp.float32),
        grid_spec=pltpu.PrefetchScalarGridSpec(
            num_scalar_prefetch=0,
            grid=grid,
            in_specs=mat_specs + [img_spec, img_spec, msk_spec],
            out_specs=img_spec,
            scratch_shapes=[pltpu.VMEM((nb * H, W), jnp.float32)
                            for _ in range(4)],
        ),
        compiler_params=pltpu.CompilerParams(
            dimension_semantics=("parallel",),
            vmem_limit_bytes=vmem_limit,
        ),
    )(*mats, x, yt, m)

    return out  # NCHW (B, 2, H, W), matching the PyTorch module


# ---------------------------------------------------------------------------
# Reference + smoke test
# ---------------------------------------------------------------------------
def _reference(xin, y, mask):
    """Plain-JAX reference mirroring the PyTorch forward (old torch.fft API)."""
    x = xin[:, 0] + 1j * xin[:, 1]                 # (B, H, W) complex
    xf = jnp.fft.fft2(x, norm="ortho")
    yf = y[..., 0] + 1j * y[..., 1]
    zf = xf + (-xf + yf) * ISCALE * mask
    z = jnp.fft.ifft2(zf, norm="ortho")
    return jnp.stack([jnp.real(z), jnp.imag(z)], axis=1)


if __name__ == "__main__":
    B, H, W = 2, 16, 16
    key = jax.random.PRNGKey(0)
    k1, k2, k3 = jax.random.split(key, 3)
    xin = jax.random.normal(k1, (B, 2, H, W), dtype=jnp.float32)   # image domain (real/imag channels)
    y = jax.random.normal(k2, (B, H, W, 2), dtype=jnp.float32)     # measured k-space (real/imag last)
    mask = (jax.random.uniform(k3, (B, H, W)) > 0.5).astype(jnp.float32)

    ref = _reference(xin, y, mask)

    out = data_fidelity_unit(xin, y, mask)                          # bf16 MXU operands (default)
    out_f32 = data_fidelity_unit(xin, y, mask, matmul_dtype=jnp.float32)
    out, out_f32 = jax.block_until_ready((out, out_f32))

    assert out.shape == (B, 2, H, W) and out_f32.shape == (B, 2, H, W)
    assert float(jnp.max(jnp.abs(out_f32 - ref))) < 1e-3, "f32 path mismatch vs jnp.fft"
    # bf16 operand rounding (~2^-8) across 4 cascaded orthonormal transforms.
    assert float(jnp.max(jnp.abs(out - ref))) < 1e-1, "bf16 path mismatch vs jnp.fft"
    print("KERNEL_OK")
</pallas_src>

<mosaic_0001>
module attributes {stable_mosaic.version = 11 : i64} {
  func.func @kernel(%arg0: i32, %arg1: memref<16x16xbf16, #tpu.memory_space<vmem>>, %arg2: memref<16x16xbf16, #tpu.memory_space<vmem>>, %arg3: memref<16x16xbf16, #tpu.memory_space<vmem>>, %arg4: memref<16x16xbf16, #tpu.memory_space<vmem>>, %arg5: memref<2x2x16x16xf32, #tpu.memory_space<vmem>>, %arg6: memref<2x2x16x16xf32, #tpu.memory_space<vmem>>, %arg7: memref<2x16x16xf32, #tpu.memory_space<vmem>>, %arg8: memref<2x2x16x16xf32, #tpu.memory_space<vmem>>, %arg9: memref<32x16xf32, #tpu.memory_space<vmem>>, %arg10: memref<32x16xf32, #tpu.memory_space<vmem>>, %arg11: memref<32x16xf32, #tpu.memory_space<vmem>>, %arg12: memref<32x16xf32, #tpu.memory_space<vmem>>) attributes {dimension_semantics = [#tpu.dimension_semantics<parallel>], iteration_bounds = array<i64: 1>, scalar_prefetch = 0 : i64, scratch_operands = 4 : i64, tpu.core_type = #tpu.core_type<tc>, window_params = [{pipeline_mode = #tpu.pipeline_mode<synchronous>, transform_indices = @transform_0, window_bounds = array<i64: 16, 16>}, {pipeline_mode = #tpu.pipeline_mode<synchronous>, transform_indices = @transform_1, window_bounds = array<i64: 16, 16>}, {pipeline_mode = #tpu.pipeline_mode<synchronous>, transform_indices = @transform_2, window_bounds = array<i64: 16, 16>}, {pipeline_mode = #tpu.pipeline_mode<synchronous>, transform_indices = @transform_3, window_bounds = array<i64: 16, 16>}, {transform_indices = @transform_4, window_bounds = array<i64: 2, 2, 16, 16>}, {transform_indices = @transform_5, window_bounds = array<i64: 2, 2, 16, 16>}, {transform_indices = @transform_6, window_bounds = array<i64: 2, 16, 16>}, {transform_indices = @transform_7, window_bounds = array<i64: 2, 2, 16, 16>}]} {
    %c0 = arith.constant 0 : index
    %c0_0 = arith.constant 0 : index
    %0 = vector.load %arg1[%c0, %c0_0] : memref<16x16xbf16, #tpu.memory_space<vmem>>, vector<16x16xbf16>
    %c0_1 = arith.constant 0 : index
    %c0_2 = arith.constant 0 : index
    %1 = vector.load %arg2[%c0_1, %c0_2] : memref<16x16xbf16, #tpu.memory_space<vmem>>, vector<16x16xbf16>
    %c0_3 = arith.constant 0 : index
    %c0_4 = arith.constant 0 : index
    %2 = vector.load %arg3[%c0_3, %c0_4] : memref<16x16xbf16, #tpu.memory_space<vmem>>, vector<16x16xbf16>
    %c0_5 = arith.constant 0 : index
    %c0_6 = arith.constant 0 : index
    %3 = vector.load %arg4[%c0_5, %c0_6] : memref<16x16xbf16, #tpu.memory_space<vmem>>, vector<16x16xbf16>
    %c0_7 = arith.constant 0 : index
    %c0_8 = arith.constant 0 : index
    %c0_9 = arith.constant 0 : index
    %c0_10 = arith.constant 0 : index
    %4 = vector.load %arg5[%c0_7, %c0_8, %c0_9, %c0_10] : memref<2x2x16x16xf32, #tpu.memory_space<vmem>>, vector<2x1x16x16xf32>
    %5 = vector.shape_cast %4 : vector<2x1x16x16xf32> to vector<2x16x16xf32>
    %6 = vector.shape_cast %5 : vector<2x16x16xf32> to vector<32x16xf32>
    %c0_11 = arith.constant 0 : index
    %c1 = arith.constant 1 : index
    %c0_12 = arith.constant 0 : index
    %c0_13 = arith.constant 0 : index
    %7 = vector.load %arg5[%c0_11, %c1, %c0_12, %c0_13] : memref<2x2x16x16xf32, #tpu.memory_space<vmem>>, vector<2x1x16x16xf32>
    %8 = vector.shape_cast %7 : vector<2x1x16x16xf32> to vector<2x16x16xf32>
    %9 = vector.shape_cast %8 : vector<2x16x16xf32> to vector<32x16xf32>
    %10 = arith.truncf %6 : vector<32x16xf32> to vector<32x16xbf16>
    %cst = arith.constant dense<0.000000e+00> : vector<32x16xf32>
    %11 = tpu.matmul %10, %0, %cst {dimension_numbers = #tpu.dot_dimension_numbers<[1], [0], [0], [1], [0, 0, 1, 1], [], []>} : vector<32x16xbf16>, vector<16x16xbf16>, vector<32x16xf32> -> vector<32x16xf32>
    %12 = arith.truncf %9 : vector<32x16xf32> to vector<32x16xbf16>
    %cst_14 = arith.constant dense<0.000000e+00> : vector<32x16xf32>
    %13 = tpu.matmul %12, %1, %cst_14 {dimension_numbers = #tpu.dot_dimension_numbers<[1], [0], [0], [1], [0, 0, 1, 1], [], []>} : vector<32x16xbf16>, vector<16x16xbf16>, vector<32x16xf32> -> vector<32x16xf32>
    %14 = arith.addf %6, %9 : vector<32x16xf32>
    %15 = arith.truncf %14 : vector<32x16xf32> to vector<32x16xbf16>
    %cst_15 = arith.constant dense<0.000000e+00> : vector<32x16xf32>
    %16 = tpu.matmul %15, %2, %cst_15 {dimension_numbers = #tpu.dot_dimension_numbers<[1], [0], [0], [1], [0, 0, 1, 1], [], []>} : vector<32x16xbf16>, vector<16x16xbf16>, vector<32x16xf32> -> vector<32x16xf32>
    %17 = arith.subf %11, %13 : vector<32x16xf32>
    %c0_16 = arith.constant 0 : index
    %c0_17 = arith.constant 0 : index
    %18 = vector.load %arg9[%c0_16, %c0_17] : memref<32x16xf32, #tpu.memory_space<vmem>>, vector<32x16xf32>
    tpu.vector_store %arg9[%c0_16, %c0_17], %17 {strides = array<i32>} : memref<32x16xf32, #tpu.memory_space<vmem>>, vector<32x16xf32>,
    %19 = arith.subf %16, %11 : vector<32x16xf32>
    %20 = arith.subf %19, %13 : vector<32x16xf32>
    %c0_18 = arith.constant 0 : index
    %c0_19 = arith.constant 0 : index
    %21 = vector.load %arg10[%c0_18, %c0_19] : memref<32x16xf32, #tpu.memory_space<vmem>>, vector<32x16xf32>
    tpu.vector_store %arg10[%c0_18, %c0_19], %20 {strides = array<i32>} : memref<32x16xf32, #tpu.memory_space<vmem>>, vector<32x16xf32>,
    %c0_i32 = arith.constant 0 : i32
    %c2_i32 = arith.constant 2 : i32
    %22 = arith.addi %c0_i32, %c2_i32 : i32
    %c1_i32 = arith.constant 1 : i32
    scf.for %arg13 = %c0_i32 to %22 step %c1_i32  : i32 {
      %c1_i32_36 = arith.constant 1 : i32
      %43 = arith.muli %arg13, %c1_i32_36 : i32
      %c0_i32_37 = arith.constant 0 : i32
      %44 = arith.addi %c0_i32_37, %43 : i32
      %c16_i32 = arith.constant 16 : i32
      %45 = arith.muli %44, %c16_i32 : i32
      %46 = tpu.assume_multiple %45, 8 : i32
      %47 = arith.index_cast %46 : i32 to index
      %c0_38 = arith.constant 0 : index
      %48 = vector.load %arg9[%47, %c0_38] : memref<32x16xf32, #tpu.memory_space<vmem>>, vector<16x16xf32>
      %49 = arith.index_cast %46 : i32 to index
      %c0_39 = arith.constant 0 : index
      %50 = vector.load %arg10[%49, %c0_39] : memref<32x16xf32, #tpu.memory_space<vmem>>, vector<16x16xf32>
      %51 = arith.truncf %48 : vector<16x16xf32> to vector<16x16xbf16>
      %cst_40 = arith.constant dense<0.000000e+00> : vector<16x16xf32>
      %52 = tpu.matmul %0, %51, %cst_40 {dimension_numbers = #tpu.dot_dimension_numbers<[1], [0], [0], [1], [0, 0, 1, 1], [], []>} : vector<16x16xbf16>, vector<16x16xbf16>, vector<16x16xf32> -> vector<16x16xf32>
      %53 = arith.truncf %50 : vector<16x16xf32> to vector<16x16xbf16>
      %cst_41 = arith.constant dense<0.000000e+00> : vector<16x16xf32>
      %54 = tpu.matmul %1, %53, %cst_41 {dimension_numbers = #tpu.dot_dimension_numbers<[1], [0], [0], [1], [0, 0, 1, 1], [], []>} : vector<16x16xbf16>, vector<16x16xbf16>, vector<16x16xf32> -> vector<16x16xf32>
      %55 = arith.addf %48, %50 : vector<16x16xf32>
      %56 = arith.truncf %55 : vector<16x16xf32> to vector<16x16xbf16>
      %cst_42 = arith.constant dense<0.000000e+00> : vector<16x16xf32>
      %57 = tpu.matmul %2, %56, %cst_42 {dimension_numbers = #tpu.dot_dimension_numbers<[1], [0], [0], [1], [0, 0, 1, 1], [], []>} : vector<16x16xbf16>, vector<16x16xbf16>, vector<16x16xf32> -> vector<16x16xf32>
      %58 = arith.subf %52, %54 : vector<16x16xf32>
      %59 = arith.subf %57, %52 : vector<16x16xf32>
      %60 = arith.subf %59, %54 : vector<16x16xf32>
      %61 = arith.index_cast %44 : i32 to index
      %c0_43 = arith.constant 0 : index
      %c0_44 = arith.constant 0 : index
      %62 = vector.load %arg7[%61, %c0_43, %c0_44] : memref<2x16x16xf32, #tpu.memory_space<vmem>>, vector<1x16x16xf32>
      %63 = vector.shape_cast %62 : vector<1x16x16xf32> to vector<16x16xf32>
      %64 = arith.index_cast %44 : i32 to index
      %c0_45 = arith.constant 0 : index
      %c0_46 = arith.constant 0 : index
      %c0_47 = arith.constant 0 : index
      %65 = vector.load %arg6[%64, %c0_45, %c0_46, %c0_47] : memref<2x2x16x16xf32, #tpu.memory_space<vmem>>, vector<1x1x16x16xf32>
      %66 = vector.shape_cast %65 : vector<1x1x16x16xf32> to vector<16x16xf32>
      %67 = arith.subf %66, %58 : vector<16x16xf32>
      %68 = arith.mulf %63, %67 : vector<16x16xf32>
      %69 = arith.addf %58, %68 : vector<16x16xf32>
      %70 = arith.index_cast %44 : i32 to index
      %c1_48 = arith.constant 1 : index
      %c0_49 = arith.constant 0 : index
      %c0_50 = arith.constant 0 : index
      %71 = vector.load %arg6[%70, %c1_48, %c0_49, %c0_50] : memref<2x2x16x16xf32, #tpu.memory_space<vmem>>, vector<1x1x16x16xf32>
      %72 = vector.shape_cast %71 : vector<1x1x16x16xf32> to vector<16x16xf32>
      %73 = arith.subf %72, %60 : vector<16x16xf32>
      %74 = arith.mulf %63, %73 : vector<16x16xf32>
      %75 = arith.addf %60, %74 : vector<16x16xf32>
      %76 = arith.truncf %69 : vector<16x16xf32> to vector<16x16xbf16>
      %cst_51 = arith.constant dense<0.000000e+00> : vector<16x16xf32>
      %77 = tpu.matmul %0, %76, %cst_51 {dimension_numbers = #tpu.dot_dimension_numbers<[1], [0], [0], [1], [0, 0, 1, 1], [], []>} : vector<16x16xbf16>, vector<16x16xbf16>, vector<16x16xf32> -> vector<16x16xf32>
      %78 = arith.truncf %75 : vector<16x16xf32> to vector<16x16xbf16>
      %cst_52 = arith.constant dense<0.000000e+00> : vector<16x16xf32>
      %79 = tpu.matmul %1, %78, %cst_52 {dimension_numbers = #tpu.dot_dimension_numbers<[1], [0], [0], [1], [0, 0, 1, 1], [], []>} : vector<16x16xbf16>, vector<16x16xbf16>, vector<16x16xf32> -> vector<16x16xf32>
      %80 = arith.addf %69, %75 : vector<16x16xf32>
      %81 = arith.truncf %80 : vector<16x16xf32> to vector<16x16xbf16>
      %cst_53 = arith.constant dense<0.000000e+00> : vector<16x16xf32>
      %82 = tpu.matmul %3, %81, %cst_53 {dimension_numbers = #tpu.dot_dimension_numbers<[1], [0], [0], [1], [0, 0, 1, 1], [], []>} : vector<16x16xbf16>, vector<16x16xbf16>, vector<16x16xf32> -> vector<16x16xf32>
      %83 = arith.addf %77, %79 : vector<16x16xf32>
      %84 = arith.index_cast %46 : i32 to index
      %c0_54 = arith.constant 0 : index
      %85 = vector.load %arg11[%84, %c0_54] : memref<32x16xf32, #tpu.memory_space<vmem>>, vector<16x16xf32>
      tpu.vector_store %arg11[%84, %c0_54], %83 {strides = array<i32>} : memref<32x16xf32, #tpu.memory_space<vmem>>, vector<16x16xf32>,
      %86 = arith.subf %82, %77 : vector<16x16xf32>
      %87 = arith.addf %86, %79 : vector<16x16xf32>
      %88 = arith.index_cast %46 : i32 to index
      %c0_55 = arith.constant 0 : index
      %89 = vector.load %arg12[%88, %c0_55] : memref<32x16xf32, #tpu.memory_space<vmem>>, vector<16x16xf32>
      tpu.vector_store %arg12[%88, %c0_55], %87 {strides = array<i32>} : memref<32x16xf32, #tpu.memory_space<vmem>>, vector<16x16xf32>,
    }
    %c2_i32_20 = arith.constant 2 : i32
    %c0_21 = arith.constant 0 : index
    %c0_22 = arith.constant 0 : index
    %23 = vector.load %arg11[%c0_21, %c0_22] : memref<32x16xf32, #tpu.memory_space<vmem>>, vector<32x16xf32>
    %c0_23 = arith.constant 0 : index
    %c0_24 = arith.constant 0 : index
    %24 = vector.load %arg12[%c0_23, %c0_24] : memref<32x16xf32, #tpu.memory_space<vmem>>, vector<32x16xf32>
    %25 = arith.truncf %23 : vector<32x16xf32> to vector<32x16xbf16>
    %cst_25 = arith.constant dense<0.000000e+00> : vector<32x16xf32>
    %26 = tpu.matmul %25, %0, %cst_25 {dimension_numbers = #tpu.dot_dimension_numbers<[1], [0], [0], [1], [0, 0, 1, 1], [], []>} : vector<32x16xbf16>, vector<16x16xbf16>, vector<32x16xf32> -> vector<32x16xf32>
    %27 = arith.truncf %24 : vector<32x16xf32> to vector<32x16xbf16>
    %cst_26 = arith.constant dense<0.000000e+00> : vector<32x16xf32>
    %28 = tpu.matmul %27, %1, %cst_26 {dimension_numbers = #tpu.dot_dimension_numbers<[1], [0], [0], [1], [0, 0, 1, 1], [], []>} : vector<32x16xbf16>, vector<16x16xbf16>, vector<32x16xf32> -> vector<32x16xf32>
    %29 = arith.subf %24, %23 : vector<32x16xf32>
    %30 = arith.truncf %29 : vector<32x16xf32> to vector<32x16xbf16>
    %cst_27 = arith.constant dense<0.000000e+00> : vector<32x16xf32>
    %31 = tpu.matmul %30, %2, %cst_27 {dimension_numbers = #tpu.dot_dimension_numbers<[1], [0], [0], [1], [0, 0, 1, 1], [], []>} : vector<32x16xbf16>, vector<16x16xbf16>, vector<32x16xf32> -> vector<32x16xf32>
    %32 = arith.addf %26, %28 : vector<32x16xf32>
    %33 = vector.shape_cast %32 : vector<32x16xf32> to vector<2x16x16xf32>
    %c0_28 = arith.constant 0 : index
    %c0_29 = arith.constant 0 : index
    %c0_30 = arith.constant 0 : index
    %c0_31 = arith.constant 0 : index
    %34 = vector.load %arg8[%c0_28, %c0_29, %c0_30, %c0_31] : memref<2x2x16x16xf32, #tpu.memory_space<vmem>>, vector<2x1x16x16xf32>
    %35 = vector.shape_cast %34 : vector<2x1x16x16xf32> to vector<2x16x16xf32>
    %36 = vector.shape_cast %33 : vector<2x16x16xf32> to vector<2x1x16x16xf32>
    tpu.vector_store %arg8[%c0_28, %c0_29, %c0_30, %c0_31], %36 {strides = array<i32>} : memref<2x2x16x16xf32, #tpu.memory_space<vmem>>, vector<2x1x16x16xf32>,
    %37 = arith.addf %31, %26 : vector<32x16xf32>
    %38 = arith.subf %37, %28 : vector<32x16xf32>
    %39 = vector.shape_cast %38 : vector<32x16xf32> to vector<2x16x16xf32>
    %c0_32 = arith.constant 0 : index
    %c1_33 = arith.constant 1 : index
    %c0_34 = arith.constant 0 : index
    %c0_35 = arith.constant 0 : index
    %40 = vector.load %arg8[%c0_32, %c1_33, %c0_34, %c0_35] : memref<2x2x16x16xf32, #tpu.memory_space<vmem>>, vector<2x1x16x16xf32>
    %41 = vector.shape_cast %40 : vector<2x1x16x16xf32> to vector<2x16x16xf32>
    %42 = vector.shape_cast %39 : vector<2x16x16xf32> to vector<2x1x16x16xf32>
    tpu.vector_store %arg8[%c0_32, %c1_33, %c0_34, %c0_35], %42 {strides = array<i32>} : memref<2x2x16x16xf32, #tpu.memory_space<vmem>>, vector<2x1x16x16xf32>,
    return
  }
  func.func @transform_0(%arg0: i32) -> (i32, i32) {
    %c0_i32 = arith.constant 0 : i32
    %c0_i32_0 = arith.constant 0 : i32
    %c0_i32_1 = arith.constant 0 : i32
    return %c0_i32, %c0_i32_0 : i32, i32
  }
  func.func @transform_1(%arg0: i32) -> (i32, i32) {
    %c0_i32 = arith.constant 0 : i32
    %c0_i32_0 = arith.constant 0 : i32
    %c0_i32_1 = arith.constant 0 : i32
    return %c0_i32, %c0_i32_0 : i32, i32
  }
  func.func @transform_2(%arg0: i32) -> (i32, i32) {
    %c0_i32 = arith.constant 0 : i32
    %c0_i32_0 = arith.constant 0 : i32
    %c0_i32_1 = arith.constant 0 : i32
    return %c0_i32, %c0_i32_0 : i32, i32
  }
  func.func @transform_3(%arg0: i32) -> (i32, i32) {
    %c0_i32 = arith.constant 0 : i32
    %c0_i32_0 = arith.constant 0 : i32
    %c0_i32_1 = arith.constant 0 : i32
    return %c0_i32, %c0_i32_0 : i32, i32
  }
  func.func @transform_4(%arg0: i32) -> (i32, i32, i32, i32) {
    %c0_i32 = arith.constant 0 : i32
    %c0_i32_0 = arith.constant 0 : i32
    %c0_i32_1 = arith.constant 0 : i32
    %c0_i32_2 = arith.constant 0 : i32
    return %arg0, %c0_i32, %c0_i32_0, %c0_i32_1 : i32, i32, i32, i32
  }
  func.func @transform_5(%arg0: i32) -> (i32, i32, i32, i32) {
    %c0_i32 = arith.constant 0 : i32
    %c0_i32_0 = arith.constant 0 : i32
    %c0_i32_1 = arith.constant 0 : i32
    %c0_i32_2 = arith.constant 0 : i32
    return %arg0, %c0_i32, %c0_i32_0, %c0_i32_1 : i32, i32, i32, i32
  }
  func.func @transform_6(%arg0: i32) -> (i32, i32, i32) {
    %c0_i32 = arith.constant 0 : i32
    %c0_i32_0 = arith.constant 0 : i32
    %c0_i32_1 = arith.constant 0 : i32
    return %arg0, %c0_i32, %c0_i32_0 : i32, i32, i32
  }
  func.func @transform_7(%arg0: i32) -> (i32, i32, i32, i32) {
    %c0_i32 = arith.constant 0 : i32
    %c0_i32_0 = arith.constant 0 : i32
    %c0_i32_1 = arith.constant 0 : i32
    %c0_i32_2 = arith.constant 0 : i32
    return %arg0, %c0_i32, %c0_i32_0, %c0_i32_1 : i32, i32, i32, i32
  }
}

</mosaic_0001>

<bundles_post_ra>
// kernel: tpu_custom_call.1
= control target key start
LH: loop header
LB: loop body
LE: loop exit
PB: predicated region body
PF: predicated region fallthrough
CT: control target
= control target key end

     0   :  { %12 = vsyncpa [#allocation7], 0  ;;  %s1050_s0 = inlined_call_operand.hbm [shape: bf16[16,16], index: 0, kind: input, shape index: {}]   ;;  %s1051_s1 = inlined_call_operand.hbm [shape: bf16[16,16], index: 1, kind: input, shape index: {}]   ;;  %s1052_s2 = inlined_call_operand.hbm [shape: bf16[16,16], index: 2, kind: input, shape index: {}]   ;;  %s1053_s3 = inlined_call_operand.hbm [shape: bf16[16,16], index: 3, kind: input, shape index: {}]   ;;  %s1054_s4 = inlined_call_operand.hbm [shape: f32[2,2,16,16], index: 4, kind: input, shape index: {}]   ;;  %s1055_s5 = inlined_call_operand.hbm [shape: f32[2,2,16,16], index: 5, kind: input, shape index: {}]   ;;  %s1056_s6 = inlined_call_operand.hbm [shape: f32[2,16,16], index: 6, kind: input, shape index: {}]   ;;  %s1057_s7 = inlined_call_operand.hbm [shape: f32[2,2,16,16], index: 7, kind: output, shape index: {}]  }
   0x1   :  { %13 = vsyncpa [#allocation10], 0 }
   0x2   :  { %14 = vsyncpa [#allocation13], 0 }
   0x3   :  { %15 = vsyncpa [#allocation16], 0 }
   0x4   :  { %16 = vsyncpa [#allocation8], 0  ;;  %s34_s26 = sshll.u32 %s1051_s1, 4  ;;  %s870_s27 = smov [#allocation9]   ;;  %s35_s26 = int_to_ptr.hbm [resolvable:$true] %s34_s26 }
   0x5   :  { %s36_s28 = sshll.u32 %s870_s27, 4  ;;  %s60_s8 = sshll.u32 %s1053_s3, 4  ;;  %s37_s28 = int_to_ptr.vmem [resolvable:$true] %s36_s28  ;;  %s61_s8 = int_to_ptr.hbm [resolvable:$true] %s60_s8 }
   0x6   :  { %s871_s9 = smov 64   ;;  %s872_s10 = smov 4  }
   0x7   :  { %42 = dma.hbm_to_vmem [thread:$0]  %s35_s26, 128, %s37_s28, [#allocation10], %s871_s9, %s871_s9, %s872_s10  }
   0x8   :  { %s873_s11 = smov [#allocation12]   ;;  %s86_s14 = sshll.u32 %s1055_s5, 4  ;;  %s87_s14 = int_to_ptr.hbm [resolvable:$true] %s86_s14 }
   0x9   :  { %s62_s12 = sshll.u32 %s873_s11, 4  ;;  %s874_s3 = smov [#allocation15]   ;;  %s63_s12 = int_to_ptr.vmem [resolvable:$true] %s62_s12 }
   0xa   :  { %68 = dma.hbm_to_vmem [thread:$0]  %s61_s8, 128, %s63_s12, [#allocation13], %s871_s9, %s871_s9, %s872_s10  }
   0xb   :  { %s88_s15 = sshll.u32 %s874_s3, 4  ;;  %s21_s18 = sshll.u32 %s1050_s0, 4  ;;  %s89_s15 = int_to_ptr.vmem [resolvable:$true] %s88_s15  ;;  %s22_s18 = int_to_ptr.hbm [resolvable:$true] %s21_s18 }
   0xc   :  { %s875_s19 = smov 128   ;;  %s876_s20 = smov 8  }
   0xd   :  { %94 = dma.hbm_to_vmem [thread:$0]  %s87_s14, 1024, %s89_s15, [#allocation16], %s875_s19, %s875_s19, %s876_s20  }
   0xe   :  { %s877_s21 = smov [#allocation6]   ;;  %s47_s5 = sshll.u32 %s1052_s2, 4  ;;  %s48_s5 = int_to_ptr.hbm [resolvable:$true] %s47_s5 }
   0xf   :  { %s23_s22 = sshll.u32 %s877_s21, 4  ;;  %s73_s26 = sshll.u32 %s1054_s4, 4  ;;  %s24_s22 = int_to_ptr.vmem [resolvable:$true] %s23_s22  ;;  %s74_s26 = int_to_ptr.hbm [resolvable:$true] %s73_s26 }
  0x10   :  { %29 = dma.hbm_to_vmem [thread:$0]  %s22_s18, 128, %s24_s22, [#allocation7], %s871_s9, %s871_s9, %s872_s10  }
  0x11   :  { %s878_s27 = smov [#allocation11]   ;;  %s879_s29 = smov [#allocation14]  }
  0x12   :  { %s49_s28 = sshll.u32 %s878_s27, 4  ;;  %s75_s2 = sshll.u32 %s879_s29, 4  ;;  %s50_s28 = int_to_ptr.vmem [resolvable:$true] %s49_s28  ;;  %s76_s2 = int_to_ptr.vmem [resolvable:$true] %s75_s2 }
  0x13   :  { %55 = dma.hbm_to_vmem [thread:$0]  %s48_s5, 128, %s50_s28, [#allocation10], %s871_s9, %s871_s9, %s872_s10  }
  0x14   :  { %s99_s11 = sshll.u32 %s1056_s6, 4  ;;  %s880_s4 = smov [#allocation17]   ;;  %s100_s11 = int_to_ptr.hbm [resolvable:$true] %s99_s11 }
  0x15   :  { %81 = dma.hbm_to_vmem [thread:$0]  %s74_s26, 1024, %s76_s2, [#allocation13], %s875_s19, %s875_s19, %s876_s20  }
  0x16   :  { %s101_s12 = sshll.u32 %s880_s4, 4  ;;  %s102_s12 = int_to_ptr.vmem [resolvable:$true] %s101_s12 }
  0x17   :  { %107 = dma.hbm_to_vmem [thread:$0]  %s100_s11, 512, %s102_s12, [#allocation16], %s875_s19, %s875_s19, %s876_s20  }
  0x18   :  { %856 = dma.done.wait [#allocation7], 128  }
  0x19   :  { %857 = vsyncadd [#allocation7], 4294967168 }
  0x1a   :  { %858 = dma.done.wait [#allocation10], 256  }
  0x1b   :  { %859 = vsyncadd [#allocation10], 4294967040 }
  0x1c   :  { %860 = dma.done.wait [#allocation13], 1152  }
  0x1d   :  { %861 = vsyncadd [#allocation13], 4294966144 }
  0x1e   :  { %862 = dma.done.wait [#allocation16], 1536  }
  0x1f   :  { %863 = vsyncadd [#allocation16], 4294965760  ;;  %v964_v0 = vld [vmem:[#allocation12] sm:$0xf]  ;;  %v966_v1 = vld [vmem:[#allocation12] sm:$0xf0] }
  0x20   :  { %v968_v2 = vld [vmem:[#allocation6] sm:$0xff]  ;;  %v970_v3 = vld [vmem:[#allocation9] sm:$0xff]  ;;  %v972_v4 = vld [vmem:[#allocation11] sm:$0xff]  ;;  %vm162_vm0 = vcmask 130048   ;;  %s992_s6 = smov 0  }
  0x21   :  { %v145_v5 = vld [vmem:[#allocation14] sm:$0xff]  ;;  %176 = vmatpush.bf16.msra.mxu0 %v968_v2  ;;  %v146_v6 = vld [vmem:[#allocation14 + $0x8] sm:$0xff]  ;;  %v150_v7 = vld [vmem:[#allocation14 + $0x10] sm:$0xff]  ;;  %638 = vmatpush.bf16.msra.mxu3 %v968_v2 }
  0x22   :  { %v151_v8 = vld [vmem:[#allocation14 + $0x18] sm:$0xff]  ;;  %209 = vmatpush.bf16.msra.mxu1 %v970_v3  ;;  %246 = vmatpush.bf16.msra.mxu2 %v972_v4  ;;  %v154_v9 = vpack.c.bf16 %v146_v6, %v145_v5  ;;  %v221_v11 = vadd.f32 %v150_v7, %v145_v5  ;;  %v147_v12 = vld [vmem:[#allocation14 + $0x20] sm:$0xff]  ;;  %v148_v13 = vld [vmem:[#allocation14 + $0x28] sm:$0xff] }
  0x23   :  { %v188_v10 = vpack.c.bf16 %v151_v8, %v150_v7  ;;  %v222_v14 = vadd.f32 %v151_v8, %v146_v6  ;;  %v155_v15 = vpack.c.bf16 %v148_v13, %v147_v12  ;;  %v152_v17 = vld [vmem:[#allocation14 + $0x30] sm:$0xff]  ;;  %v153_v18 = vld [vmem:[#allocation14 + $0x38] sm:$0xff] }
  0x24   :  { %599 = vmatmul.msk.bf16.vlgmr.msra.gmra.mxu0 %vm162_vm0, %v154_v9  ;;  %v223_v19 = vadd.f32 %v152_v17, %v147_v12  ;;  %v224_v20 = vadd.f32 %v153_v18, %v148_v13  ;;  %v189_v21 = vpack.c.bf16 %v153_v18, %v152_v17 }
  0x25   :  { %605 = vmatmul.msk.bf16.vlgmr.msra.gmra.mxu1 %vm162_vm0, %v188_v10  ;;  %v225_v16 = vpack.c.bf16 %v222_v14, %v221_v11  ;;  %600 = vmatmul.msk.bf16.vlgmr.msra.gmra.mxu3 %vm162_vm0, %v155_v15 }
  0x26   :  { %v226_v22 = vpack.c.bf16 %v224_v20, %v223_v19 }
  0x27   :  { %611 = vmatmul.msk.bf16.vlgmr.msra.gmra.mxu2 %vm162_vm0, %v225_v16 }
  0x35   :  { %606 = vmatmul.msk.bf16.gmra.mxu1 %vm162_vm0, %v189_v21 }
  0x37   :  { %612 = vmatmul.msk.bf16.gmra.mxu2 %vm162_vm0, %v226_v22 }
  0xa1   :  { %v178_v23 = vpop.f32.mrf.mxu0 }
  0xa2   :  { %v211_v24 = vpop.f32.mrf.mxu1 }
  0xa3   :  { %v258_v25 = vsub.f32 %v178_v23, %v211_v24 }
  0xa5   :  { %262 = vst.msk [vmem:[#allocation2] sm:$0xff] %vm162_vm0, %v258_v25 }
  0xa8   :  { %v183_v32 = vpop.f32.mrf.mxu3 }
  0xa9   :  { %v180_v26 = vpop.f32.mrf.mxu0 }
  0xaa   :  { %v248_v27 = vpop.f32.mrf.mxu2  ;;  %v213_v28 = vpop.f32.mrf.mxu1 }
  0xab   :  { %v266_v29 = vsub.f32 %v248_v27, %v178_v23  ;;  %v259_v30 = vsub.f32 %v180_v26, %v213_v28 }
  0xad   :  { %v270_v31 = vsub.f32 %v266_v29, %v211_v24  ;;  %263 = vst.msk [vmem:[#allocation2 + $0x8] sm:$0xff] %vm162_vm0, %v259_v30 }
  0xaf   :  { %274 = vst.msk [vmem:[#allocation3] sm:$0xff] %vm162_vm0, %v270_v31 }
  0xb0   :  { %v185_v38 = vpop.f32.mrf.mxu3 }
  0xb2   :  { %v250_v33 = vpop.f32.mrf.mxu2  ;;  %v216_v34 = vpop.f32.mrf.mxu1 }
  0xb3   :  { %v267_v35 = vsub.f32 %v250_v33, %v180_v26  ;;  %v260_v36 = vsub.f32 %v183_v32, %v216_v34 }
  0xb5   :  { %v271_v37 = vsub.f32 %v267_v35, %v213_v28  ;;  %264 = vst.msk [vmem:[#allocation2 + $0x10] sm:$0xff] %vm162_vm0, %v260_v36 }
  0xb7   :  { %275 = vst.msk [vmem:[#allocation3 + $0x8] sm:$0xff] %vm162_vm0, %v271_v37 }
  0xba   :  { %v253_v39 = vpop.f32.mrf.mxu2  ;;  %v218_v40 = vpop.f32.mrf.mxu1 }
  0xbb   :  { %v268_v41 = vsub.f32 %v253_v39, %v183_v32  ;;  %v261_v42 = vsub.f32 %v185_v38, %v218_v40 }
  0xbd   :  { %v272_v43 = vsub.f32 %v268_v41, %v216_v34  ;;  %265 = vst.msk [vmem:[#allocation2 + $0x18] sm:$0xff] %vm162_vm0, %v261_v42 }
  0xbf   :  { %276 = vst.msk [vmem:[#allocation3 + $0x10] sm:$0xff] %vm162_vm0, %v272_v43 }
  0xc2   :  { %v255_v44 = vpop.f32.mrf.mxu2 }
  0xc3   :  { %v269_v45 = vsub.f32 %v255_v44, %v185_v38 }
  0xc5   :  { %v273_v46 = vsub.f32 %v269_v45, %v218_v40 }
  0xc7   :  { %277 = vst.msk [vmem:[#allocation3 + $0x18] sm:$0xff] %vm162_vm0, %v273_v46 }
  0xc8 LB: > { %s998_s9 = sshll.u32 %s868_s6, 4  ;;  %s617_s13 = sshll.u32 %s868_s6, 5  ;;  %v626_v32 = vor.u32 %v966_v1, %v964_v0  ;;  %s868_s6 = sphi %s992_s6, %s283_s6  }
  0xc9   : > { %s285_s10 = scalar_lea.vmem [#allocation2], %s998_s9  ;;  %s288_s1 = scalar_lea.vmem [#allocation3], %s998_s9 }
  0xca   : > { %v286_v47 = vld [vmem:[%s285_s10] sm:$0xff]  ;;  %v287_v48 = vld [vmem:[%s285_s10 + $0x8] sm:$0xff]  ;;  %s357_s14 = scalar_lea.vmem [#allocation15], %s617_s13  ;;  %s353_s3 = scalar_lea.vmem [#allocation17], %s998_s9 }
  0xcb   : > { %v291_v50 = vpack.c.bf16 %v287_v48, %v286_v47  ;;  %v358_v59 = vld [vmem:[%s357_s14] sm:$0xff]  ;;  %v359_v63 = vld [vmem:[%s357_s14 + $0x8] sm:$0xff]  ;;  %v619_v13 = vld [vmem:[%s357_s14 + $0x10] sm:$0xff]  ;;  %s433_s15 = scalar_lea.vmem [#allocation4], %s998_s9  ;;  %s440_s16 = scalar_lea.vmem [#allocation5], %s998_s9 }
  0xcc   : > { %v354_v6 = vld [vmem:[%s353_s3] sm:$0xff]  ;;  %v355_v9 = vld [vmem:[%s353_s3 + $0x8] sm:$0xff]  ;;  %v620_v21 = vld [vmem:[%s357_s14 + $0x18] sm:$0xff]  ;;  %s283_s6 = sadd.s32 1, %s868_s6  }
  0xcd   : > { %302 = vmatpush.bf16.msra.mxu0 %v291_v50  ;;  %p280_p0 = scmp.ge.s32.totalorder %s283_s6, 2  }
  0xce   : > { %v289_v49 = vld [vmem:[%s288_s1] sm:$0xff]  ;;  %v290_v51 = vld [vmem:[%s288_s1 + $0x8] sm:$0xff]  ;;  %s881_s17 = smov (%p280_p0), [#allocation18]   ;;  %s559_s23 = sshll.u32 (%p280_p0), %s1057_s7, 4  ;;  %s560_s23 = int_to_ptr.hbm [resolvable:$true] %s559_s23 }
  0xcf   : > { %v327_v52 = vadd.f32 %v289_v49, %v286_v47  ;;  %v309_v53 = vpack.c.bf16 %v290_v51, %v289_v49  ;;  %v328_v54 = vadd.f32 %v290_v51, %v287_v48  ;;  %s557_s18 = sshll.u32 (%p280_p0), %s881_s17, 4  ;;  %s558_s18 = int_to_ptr.vmem [resolvable:$true] %s557_s18 }
  0xd0   : > { %614 = vmatmul.msk.bf16.vlgmr.msra.gmra.mxu0 %vm162_vm0, %v968_v2 }
  0xd1   : > { %320 = vmatpush.bf16.msra.mxu1 %v309_v53  ;;  %v329_v55 = vpack.c.bf16 %v328_v54, %v327_v52 }
  0xd3   : > { %340 = vmatpush.bf16.msra.mxu2 %v329_v55 }
  0xd4   : > { %615 = vmatmul.msk.bf16.vlgmr.msra.gmra.mxu1 %vm162_vm0, %v970_v3 }
  0xd6   : > { %616 = vmatmul.msk.bf16.vlgmr.msra.gmra.mxu2 %vm162_vm0, %v972_v4 }
  0xd7   :  { %532 = vmatpush.bf16.msra.mxu2 (%p280_p0), %v972_v4 }
 0x14d   : > { %v304_v56 = vpop.f32.mrf.mxu0 }
 0x151   : > { %v322_v57 = vpop.f32.mrf.mxu1 }
 0x152   : > { %v347_v58 = vsub.f32 %v304_v56, %v322_v57 }
 0x154   : > { %v360_v60 = vsub.f32 %v358_v59, %v347_v58 }
 0x155   : > { %v306_v61 = vpop.f32.mrf.mxu0 }
 0x156   : > { %v362_v12 = vmul.f32 %v360_v60, %v354_v6 }
 0x158   : > { %v364_v16 = vadd.f32 %v362_v12, %v347_v58 }
 0x159   : > { %v324_v62 = vpop.f32.mrf.mxu1  ;;  %v342_v5 = vpop.f32.mrf.mxu2 }
 0x15a   : > { %v348_v7 = vsub.f32 %v306_v61, %v324_v62  ;;  %v349_v8 = vsub.f32 %v342_v5, %v304_v56 }
 0x15c   : > { %v361_v10 = vsub.f32 %v359_v63, %v348_v7  ;;  %v351_v11 = vsub.f32 %v349_v8, %v322_v57 }
 0x15e   : > { %v363_v14 = vmul.f32 %v361_v10, %v355_v9  ;;  %v370_v15 = vsub.f32 %v619_v13, %v351_v11 }
 0x160   : > { %v365_v17 = vadd.f32 %v363_v14, %v348_v7  ;;  %v372_v23 = vmul.f32 %v370_v15, %v354_v6 }
 0x161   : > { %v344_v18 = vpop.f32.mrf.mxu2 }
 0x162   : > { %v350_v19 = vsub.f32 %v344_v18, %v306_v61  ;;  %v376_v20 = vpack.c.bf16 %v365_v17, %v364_v16  ;;  %v374_v26 = vadd.f32 %v372_v23, %v351_v11 }
 0x164   : > { %v352_v22 = vsub.f32 %v350_v19, %v324_v62  ;;  %384 = vmatpush.bf16.msra.mxu3 %v376_v20  ;;  %v406_v29 = vadd.f32 %v374_v26, %v364_v16 }
 0x166   : > { %v371_v24 = vsub.f32 %v620_v21, %v352_v22 }
 0x167   : > { %621 = vmatmul.msk.bf16.vlgmr.msra.gmra.mxu3 %vm162_vm0, %v968_v2 }
 0x168   : > { %v373_v25 = vmul.f32 %v371_v24, %v355_v9  ;;  %639 = vmatpush.bf16.msra.mxu3 (%p280_p0), %v968_v2 }
 0x16a   : > { %v375_v27 = vadd.f32 %v373_v25, %v352_v22 }
 0x16c   : > { %v391_v28 = vpack.c.bf16 %v375_v27, %v374_v26  ;;  %v407_v30 = vadd.f32 %v375_v27, %v365_v17 }
 0x16e   : > { %399 = vmatpush.bf16.msrb.mxu0 %v391_v28  ;;  %v408_v31 = vpack.c.bf16 %v407_v30, %v406_v29 }
 0x170   : > { %424 = vmatpush.bf16.msrb.mxu1 %v408_v31 }
 0x171   : > { %622 = vmatmul.msk.bf16.vlgmr.msrb.gmra.mxu0 %vm162_vm0, %v970_v3 }
 0x172   :  { %466 = vmatpush.bf16.msra.mxu0 (%p280_p0), %v968_v2 }
 0x173   : > { %627 = vmatmul.msk.bf16.vlgmr.msrb.gmra.mxu1 %vm162_vm0, %v626_v32 }
 0x174   :  { %493 = vmatpush.bf16.msra.mxu1 (%p280_p0), %v970_v3 }
 0x1ea   : > { %v386_v33 = vpop.f32.mrf.mxu3 }
 0x1ee   : > { %v401_v34 = vpop.f32.mrf.mxu0 }
 0x1ef   : > { %v431_v35 = vadd.f32 %v401_v34, %v386_v33 }
 0x1f0   : > { %v426_v36 = vpop.f32.mrf.mxu1 }
 0x1f1   : > { %v436_v37 = vsub.f32 %v426_v36, %v386_v33  ;;  %434 = vst.msk [vmem:[%s433_s15] sm:$0xff] %vm162_vm0, %v431_v35 }
 0x1f2   : > { %v388_v39 = vpop.f32.mrf.mxu3 }
 0x1f3   : > { %v438_v38 = vadd.f32 %v436_v37, %v401_v34 }
 0x1f5   : > { %441 = vst.msk [vmem:[%s440_s16] sm:$0xff] %vm162_vm0, %v438_v38 }
 0x1f6   : > { %v403_v40 = vpop.f32.mrf.mxu0 }
 0x1f7   : > { %v432_v41 = vadd.f32 %v403_v40, %v388_v39 }
 0x1f8   : > { %v428_v42 = vpop.f32.mrf.mxu1 }
 0x1f9   : > { %435 = vst.msk [vmem:[%s433_s15 + $0x8] sm:$0xff] %vm162_vm0, %v432_v41  ;;  %v437_v43 = vsub.f32 %v428_v42, %v388_v39  ;;  %282 = sbr.rel (!%p280_p0) target bundleno = 200 (0xc8), region = 92 }
 0x1fb   : > { %v439_v44 = vadd.f32 %v437_v43, %v403_v40 }
 0x1fd   : > { %442 = vst.msk [vmem:[%s440_s16 + $0x8] sm:$0xff] %vm162_vm0, %v439_v44 }
 0x200   :  { %v443_v47 = vld [vmem:[#allocation4] sm:$0xff]  ;;  %v444_v49 = vld [vmem:[#allocation4 + $0x8] sm:$0xff]  ;;  %v445_v51 = vld [vmem:[#allocation4 + $0x10] sm:$0xff] }
 0x201   :  { %v446_v52 = vld [vmem:[#allocation4 + $0x18] sm:$0xff]  ;;  %v451_v53 = vpack.c.bf16 %v444_v49, %v443_v47 }
 0x202   :  { %v452_v55 = vpack.c.bf16 %v446_v52, %v445_v51 }
 0x203   :  { %628 = vmatmul.msk.bf16.vlgmr.msra.gmra.mxu0 %vm162_vm0, %v451_v53 }
 0x204   :  { %v447_v45 = vld [vmem:[#allocation5] sm:$0xff]  ;;  %v448_v46 = vld [vmem:[#allocation5 + $0x8] sm:$0xff]  ;;  %629 = vmatmul.msk.bf16.vlgmr.msra.gmra.mxu3 %vm162_vm0, %v452_v55  ;;  %v449_v1 = vld [vmem:[#allocation5 + $0x10] sm:$0xff] }
 0x205   :  { %v478_v48 = vpack.c.bf16 %v448_v46, %v447_v45  ;;  %v505_v50 = vsub.f32 %v447_v45, %v443_v47  ;;  %v506_v54 = vsub.f32 %v448_v46, %v444_v49  ;;  %v450_v3 = vld [vmem:[#allocation5 + $0x18] sm:$0xff]  ;;  %v507_v4 = vsub.f32 %v449_v1, %v445_v51 }
 0x206   :  { %v508_v56 = vsub.f32 %v450_v3, %v446_v52  ;;  %v479_v57 = vpack.c.bf16 %v450_v3, %v449_v1 }
 0x207   :  { %630 = vmatmul.msk.bf16.vlgmr.msra.gmra.mxu1 %vm162_vm0, %v478_v48  ;;  %v509_v0 = vpack.c.bf16 %v506_v54, %v505_v50 }
 0x208   :  { %v510_v2 = vpack.c.bf16 %v508_v56, %v507_v4 }
 0x209   :  { %632 = vmatmul.msk.bf16.vlgmr.msra.gmra.mxu2 %vm162_vm0, %v509_v0 }
 0x217   :  { %631 = vmatmul.msk.bf16.gmra.mxu1 %vm162_vm0, %v479_v57 }
 0x219   :  { %633 = vmatmul.msk.bf16.gmra.mxu2 %vm162_vm0, %v510_v2 }
 0x280   :  { %v468_v59 = vpop.f32.mrf.mxu0 }
 0x284   :  { %v495_v58 = vpop.f32.mrf.mxu1 }
 0x285   :  { %v511_v60 = vadd.f32 %v495_v58, %v468_v59 }
 0x287   :  { %515 = vst.msk [vmem:[#allocation18] sm:$0xff] %vm162_vm0, %v511_v60  ;;  %v473_v8 = vpop.f32.mrf.mxu3 }
 0x288   :  { %v470_v63 = vpop.f32.mrf.mxu0 }
 0x28c   :  { %v497_v61 = vpop.f32.mrf.mxu1  ;;  %v534_v62 = vpop.f32.mrf.mxu2 }
 0x28d   :  { %v535_v5 = vadd.f32 %v534_v62, %v468_v59  ;;  %v512_v6 = vadd.f32 %v497_v61, %v470_v63 }
 0x28f   :  { %v544_v7 = vsub.f32 %v535_v5, %v495_v58  ;;  %516 = vst.msk [vmem:[#allocation18 + $0x8] sm:$0xff] %vm162_vm0, %v512_v6  ;;  %v475_v14 = vpop.f32.mrf.mxu3 }
 0x291   :  { %549 = vst.msk [vmem:[#allocation18 + $0x10] sm:$0xff] %vm162_vm0, %v544_v7 }
 0x294   :  { %v500_v9 = vpop.f32.mrf.mxu1  ;;  %v536_v11 = vpop.f32.mrf.mxu2 }
 0x295   :  { %v513_v10 = vadd.f32 %v500_v9, %v473_v8  ;;  %v537_v12 = vadd.f32 %v536_v11, %v470_v63 }
 0x297   :  { %517 = vst.msk [vmem:[#allocation18 + $0x20] sm:$0xff] %vm162_vm0, %v513_v10  ;;  %v545_v13 = vsub.f32 %v537_v12, %v497_v61 }
 0x299   :  { %550 = vst.msk [vmem:[#allocation18 + $0x18] sm:$0xff] %vm162_vm0, %v545_v13 }
 0x29c   :  { %v502_v15 = vpop.f32.mrf.mxu1  ;;  %v539_v17 = vpop.f32.mrf.mxu2 }
 0x29d   :  { %v514_v16 = vadd.f32 %v502_v15, %v475_v14  ;;  %v540_v18 = vadd.f32 %v539_v17, %v473_v8 }
 0x29f   :  { %518 = vst.msk [vmem:[#allocation18 + $0x28] sm:$0xff] %vm162_vm0, %v514_v16  ;;  %v546_v19 = vsub.f32 %v540_v18, %v500_v9 }
 0x2a1   :  { %551 = vst.msk [vmem:[#allocation18 + $0x30] sm:$0xff] %vm162_vm0, %v546_v19 }
 0x2a4   :  { %v541_v20 = vpop.f32.mrf.mxu2 }
 0x2a5   :  { %v542_v21 = vadd.f32 %v541_v20, %v475_v14 }
 0x2a7   :  { %v547_v22 = vsub.f32 %v542_v21, %v502_v15 }
 0x2a9   :  { %552 = vst.msk [vmem:[#allocation18 + $0x38] sm:$0xff] %vm162_vm0, %v547_v22 }
 0x2aa   :  { %565 = dma.vmem_to_hbm [thread:$0]  %s558_s18, 1024, %s560_s23, [#allocation8], %s875_s19, %s875_s19, %s876_s20  }
 0x2ab   :  { %864 = dma.done.wait [#allocation8], 1024  }
 0x2ac   :  { %865 = vsyncadd [#allocation8], 4294966272 }
 0x2ad   :  { %570 = vsyncpa [#allocation7], 1 }
 0x2ae   :  { %571 = vsyncpa [#allocation10], 1 }
 0x2af   :  { %572 = vsyncpa [#allocation13], 1 }
 0x2b0   :  { %573 = vsyncpa [#allocation16], 1 }
 0x2b1   :  { %574 = vsyncpa [#allocation8], 1 }

</bundles_post_ra>
